<compile_context>
chip_gen: v5e
topology: v5e:2x2
jax: 0.10.0
libtpu: 0.0.40
codegen_flags: <defaults>
</compile_context>

<pallas_src>
import math
import functools

import jax
import jax.numpy as jnp
from jax.experimental import pallas as pl
from jax.experimental.pallas import tpu as pltpu


def _layernorm(x, w, b, eps=1e-5):
    mu = jnp.mean(x, axis=-1, keepdims=True)
    var = jnp.mean((x - mu) ** 2, axis=-1, keepdims=True)
    return (x - mu) * jax.lax.rsqrt(var + eps) * w + b


def _gelu_tanh(x):
    c = math.sqrt(2.0 / math.pi)
    return 0.5 * x * (1.0 + jnp.tanh(c * (x + 0.044715 * x * x * x)))


def block_kernel(x_ref,
                 ln1w_ref, ln1b_ref,
                 wqkv_ref, bqkv_ref, wo_ref, bo_ref,
                 ln2w_ref, ln2b_ref,
                 wfc_ref, bfc_ref, wmp_ref, bmp_ref,
                 o_ref, *, n_head):
    f32 = jnp.float32
    bf16 = jnp.bfloat16

    x = x_ref[0]                                   # (T, C) f32 residual stream
    T, C = x.shape
    hd = C // n_head

    # ---- ln_1 + causal self attention ----
    # LN in f32, single cast to bf16 for the MXU.
    h = _layernorm(x, ln1w_ref[0], ln1b_ref[0]).astype(bf16)
    # Fused QKV projection (bf16 x bf16 -> f32 accumulate).  The 1/sqrt(hd)
    # attention scale is already folded into the Q weights/bias (wrapper).
    qkv = jnp.dot(h, wqkv_ref[...], preferred_element_type=f32) + bqkv_ref[0]

    row = jax.lax.broadcasted_iota(jnp.int32, (T, T), 0)
    col = jax.lax.broadcasted_iota(jnp.int32, (T, T), 1)
    causal = col <= row

    # Per-head attention; head results are accumulated directly through the
    # per-head slab of the output projection (no concatenate).
    attn = jnp.zeros((T, C), f32)
    for hh in range(n_head):                        # static unroll over heads
        qh = qkv[:, hh * hd:(hh + 1) * hd].astype(bf16)
        kh = qkv[:, C + hh * hd:C + (hh + 1) * hd].astype(bf16)
        vh = qkv[:, 2 * C + hh * hd:2 * C + (hh + 1) * hd].astype(bf16)
        # q @ k^T without materializing a transpose.
        s = jax.lax.dot_general(qh, kh, (((1,), (1,)), ((), ())),
                                preferred_element_type=f32)
        s = jnp.where(causal, s, -jnp.inf)
        p = jnp.exp(s - jnp.max(s, axis=-1, keepdims=True))
        # EUP approx reciprocal instead of a VALU divide (exp slot is busy anyway).
        p = p * pl.reciprocal(jnp.sum(p, axis=-1, keepdims=True), approx=True)
        yh = jnp.dot(p.astype(bf16), vh, preferred_element_type=f32)        # (T, hd)
        attn = attn + jnp.dot(yh.astype(bf16), wo_ref[hh],
                              preferred_element_type=f32)                   # (T, C)
    x = x + attn + bo_ref[0]                                                # residual 1

    # ---- ln_2 + MLP (GELU tanh) ----
    h = _layernorm(x, ln2w_ref[0], ln2b_ref[0]).astype(bf16)
    h = jnp.dot(h, wfc_ref[...], preferred_element_type=f32) + bfc_ref[0]
    h = _gelu_tanh(h)
    h = jnp.dot(h.astype(bf16), wmp_ref[...], preferred_element_type=f32) + bmp_ref[0]
    o_ref[0] = x + h                                                        # residual 2


def transformer_block(x, params, n_head):
    B, T, C = x.shape
    hd = C // n_head
    (ln1w, ln1b, wqkv, bqkv, wo, bo, ln2w, ln2b, wfc, bfc, wmp, bmp) = params

    # Fold the 1/sqrt(hd) attention scale into the Q projection columns (free).
    scale = 1.0 / math.sqrt(hd)
    col_scale = jnp.concatenate(
        [jnp.full((C,), scale, jnp.float32), jnp.ones((2 * C,), jnp.float32)])
    wqkv_b = (wqkv * col_scale[None, :]).astype(jnp.bfloat16)
    bqkv_s = (bqkv * col_scale[None, :]).astype(jnp.float32)

    # bf16 weights (MXU native, half the VMEM/HBM footprint). LN params / biases f32.
    wo_h = wo.reshape(n_head, hd, C).astype(jnp.bfloat16)   # per-head Wo slabs
    wfc_b = wfc.astype(jnp.bfloat16)
    wmp_b = wmp.astype(jnp.bfloat16)

    def full(shape):
        nd = len(shape)
        return pl.BlockSpec(shape, lambda b, _nd=nd: (0,) * _nd)

    in_specs = [
        pl.BlockSpec((1, T, C), lambda b: (b, 0, 0)),   # x (per-batch tile)
        full(ln1w.shape), full(ln1b.shape),
        full(wqkv_b.shape), full(bqkv_s.shape),
        full(wo_h.shape), full(bo.shape),
        full(ln2w.shape), full(ln2b.shape),
        full(wfc_b.shape), full(bfc.shape),
        full(wmp_b.shape), full(bmp.shape),
    ]
    out_specs = pl.BlockSpec((1, T, C), lambda b: (b, 0, 0))

    # Advisory cost estimate for XLA's scheduler.
    flops = int(B * (2 * T * C * (12 * C) + 4 * T * T * C))
    transcendentals = int(B * (n_head * T * T + 4 * T * C))
    bytes_accessed = int(2 * B * T * C * 4            # x in + out (f32)
                         + 12 * C * C * 2             # bf16 weights
                         + 13 * C * 4)                # biases + LN params (f32)

    return pl.pallas_call(
        functools.partial(block_kernel, n_head=n_head),
        out_shape=jax.ShapeDtypeStruct((B, T, C), jnp.float32),
        grid=(B,),
        in_specs=in_specs,
        out_specs=out_specs,
        compiler_params=pltpu.CompilerParams(
            dimension_semantics=("parallel",),
            vmem_limit_bytes=64 * 1024 * 1024),
        cost_estimate=pl.CostEstimate(
            flops=flops,
            transcendentals=transcendentals,
            bytes_accessed=bytes_accessed),
    )(x, ln1w, ln1b, wqkv_b, bqkv_s, wo_h, bo, ln2w, ln2b, wfc_b, bfc, wmp_b, bmp)


def reference_block(x, params, n_head):
    """Pure-JAX f32 reference for verification."""
    (ln1w, ln1b, wqkv, bqkv, wo, bo, ln2w, ln2b, wfc, bfc, wmp, bmp) = params
    B, T, C = x.shape
    hd = C // n_head

    def ln(x, w, b):
        mu = jnp.mean(x, -1, keepdims=True)
        var = jnp.mean((x - mu) ** 2, -1, keepdims=True)
        return (x - mu) * jax.lax.rsqrt(var + 1e-5) * w[0] + b[0]

    h = ln(x, ln1w, ln1b)
    qkv = h @ wqkv + bqkv[0]
    q, k, v = jnp.split(qkv, 3, axis=-1)
    q = q.reshape(B, T, n_head, hd).transpose(0, 2, 1, 3)
    k = k.reshape(B, T, n_head, hd).transpose(0, 2, 1, 3)
    v = v.reshape(B, T, n_head, hd).transpose(0, 2, 1, 3)
    s = jnp.einsum('bhtd,bhsd->bhts', q, k) / math.sqrt(hd)
    mask = jnp.tril(jnp.ones((T, T), bool))
    s = jnp.where(mask, s, -jnp.inf)
    p = jax.nn.softmax(s, axis=-1)
    y = jnp.einsum('bhts,bhsd->bhtd', p, v).transpose(0, 2, 1, 3).reshape(B, T, C)
    x = x + (y @ wo + bo[0])
    h = ln(x, ln2w, ln2b)
    h = h @ wfc + bfc[0]
    h = 0.5 * h * (1.0 + jnp.tanh(math.sqrt(2 / math.pi) * (h + 0.044715 * h ** 3)))
    return x + (h @ wmp + bmp[0])


if __name__ == "__main__":
    B, T, C, n_head = 2, 8, 32, 4   # block_size = T = 8

    key = jax.random.PRNGKey(0)
    ks = jax.random.split(key, 8)

    # Deterministic synthetic parameters (GPT-2-style small init).
    ln1w = jnp.ones((1, C), jnp.float32)
    ln1b = jnp.zeros((1, C), jnp.float32)
    wqkv = 0.02 * jax.random.normal(ks[0], (C, 3 * C), jnp.float32)
    bqkv = jnp.zeros((1, 3 * C), jnp.float32)
    wo = 0.02 * jax.random.normal(ks[1], (C, C), jnp.float32)
    bo = jnp.zeros((1, C), jnp.float32)
    ln2w = jnp.ones((1, C), jnp.float32)
    ln2b = jnp.zeros((1, C), jnp.float32)
    wfc = 0.02 * jax.random.normal(ks[2], (C, 4 * C), jnp.float32)
    bfc = jnp.zeros((1, 4 * C), jnp.float32)
    wmp = 0.02 * jax.random.normal(ks[3], (4 * C, C), jnp.float32)
    bmp = jnp.zeros((1, C), jnp.float32)
    params = (ln1w, ln1b, wqkv, bqkv, wo, bo, ln2w, ln2b, wfc, bfc, wmp, bmp)

    x = jax.random.normal(ks[4], (B, T, C), jnp.float32)

    out = transformer_block(x, params, n_head)
    out = jax.block_until_ready(out)

    ref = reference_block(x, params, n_head)
    # Tolerance loosened vs f32 reference: matmul inputs are bf16 in the kernel.
    assert jnp.allclose(out, ref, atol=2e-2, rtol=2e-2), "mismatch vs reference"

    print("KERNEL_OK")
</pallas_src>

<mosaic_0001>
module attributes {stable_mosaic.version = 11 : i64} {
  func.func @block_kernel(%arg0: i32, %arg1: memref<1x8x32xf32, #tpu.memory_space<vmem>>, %arg2: memref<1x32xf32, #tpu.memory_space<vmem>>, %arg3: memref<1x32xf32, #tpu.memory_space<vmem>>, %arg4: memref<32x96xbf16, #tpu.memory_space<vmem>>, %arg5: memref<1x96xf32, #tpu.memory_space<vmem>>, %arg6: memref<4x8x32xbf16, #tpu.memory_space<vmem>>, %arg7: memref<1x32xf32, #tpu.memory_space<vmem>>, %arg8: memref<1x32xf32, #tpu.memory_space<vmem>>, %arg9: memref<1x32xf32, #tpu.memory_space<vmem>>, %arg10: memref<32x128xbf16, #tpu.memory_space<vmem>>, %arg11: memref<1x128xf32, #tpu.memory_space<vmem>>, %arg12: memref<128x32xbf16, #tpu.memory_space<vmem>>, %arg13: memref<1x32xf32, #tpu.memory_space<vmem>>, %arg14: memref<1x8x32xf32, #tpu.memory_space<vmem>>) attributes {dimension_semantics = [#tpu.dimension_semantics<parallel>], iteration_bounds = array<i64: 2>, scalar_prefetch = 0 : i64, scratch_operands = 0 : i64, tpu.core_type = #tpu.core_type<tc>, window_params = [{transform_indices = @transform_0, window_bounds = array<i64: 1, 8, 32>}, {pipeline_mode = #tpu.pipeline_mode<synchronous>, transform_indices = @transform_1, window_bounds = array<i64: 1, 32>}, {pipeline_mode = #tpu.pipeline_mode<synchronous>, transform_indices = @transform_2, window_bounds = array<i64: 1, 32>}, {pipeline_mode = #tpu.pipeline_mode<synchronous>, transform_indices = @transform_3, window_bounds = array<i64: 32, 96>}, {pipeline_mode = #tpu.pipeline_mode<synchronous>, transform_indices = @transform_4, window_bounds = array<i64: 1, 96>}, {pipeline_mode = #tpu.pipeline_mode<synchronous>, transform_indices = @transform_5, window_bounds = array<i64: 4, 8, 32>}, {pipeline_mode = #tpu.pipeline_mode<synchronous>, transform_indices = @transform_6, window_bounds = array<i64: 1, 32>}, {pipeline_mode = #tpu.pipeline_mode<synchronous>, transform_indices = @transform_7, window_bounds = array<i64: 1, 32>}, {pipeline_mode = #tpu.pipeline_mode<synchronous>, transform_indices = @transform_8, window_bounds = array<i64: 1, 32>}, {pipeline_mode = #tpu.pipeline_mode<synchronous>, transform_indices = @transform_9, window_bounds = array<i64: 32, 128>}, {pipeline_mode = #tpu.pipeline_mode<synchronous>, transform_indices = @transform_10, window_bounds = array<i64: 1, 128>}, {pipeline_mode = #tpu.pipeline_mode<synchronous>, transform_indices = @transform_11, window_bounds = array<i64: 128, 32>}, {pipeline_mode = #tpu.pipeline_mode<synchronous>, transform_indices = @transform_12, window_bounds = array<i64: 1, 32>}, {transform_indices = @transform_13, window_bounds = array<i64: 1, 8, 32>}]} {
    %c0 = arith.constant 0 : index
    %c0_0 = arith.constant 0 : index
    %c0_1 = arith.constant 0 : index
    %0 = vector.load %arg1[%c0, %c0_0, %c0_1] : memref<1x8x32xf32, #tpu.memory_space<vmem>>, vector<1x8x32xf32>
    %1 = vector.shape_cast %0 : vector<1x8x32xf32> to vector<8x32xf32>
    %c0_2 = arith.constant 0 : index
    %c0_3 = arith.constant 0 : index
    %2 = vector.load %arg2[%c0_2, %c0_3] : memref<1x32xf32, #tpu.memory_space<vmem>>, vector<1x32xf32>
    %3 = vector.shape_cast %2 : vector<1x32xf32> to vector<32xf32>
    %c0_4 = arith.constant 0 : index
    %c0_5 = arith.constant 0 : index
    %4 = vector.load %arg3[%c0_4, %c0_5] : memref<1x32xf32, #tpu.memory_space<vmem>>, vector<1x32xf32>
    %5 = vector.shape_cast %4 : vector<1x32xf32> to vector<32xf32>
    %cst = arith.constant dense<0.000000e+00> : vector<8xf32>
    %6 = vector.multi_reduction <add>, %1, %cst [1] : vector<8x32xf32> to vector<8xf32>
    %7 = vector.shape_cast %6 : vector<8xf32> to vector<8x1xf32>
    %cst_6 = arith.constant 3.200000e+01 : f32
    %8 = vector.broadcast %cst_6 : f32 to vector<8x1xf32>
    %9 = arith.divf %7, %8 : vector<8x1xf32>
    %10 = vector.broadcast %9 : vector<8x1xf32> to vector<8x32xf32>
    %11 = arith.subf %1, %10 : vector<8x32xf32>
    %12 = arith.mulf %11, %11 : vector<8x32xf32>
    %cst_7 = arith.constant dense<0.000000e+00> : vector<8xf32>
    %13 = vector.multi_reduction <add>, %12, %cst_7 [1] : vector<8x32xf32> to vector<8xf32>
    %14 = vector.shape_cast %13 : vector<8xf32> to vector<8x1xf32>
    %cst_8 = arith.constant 3.200000e+01 : f32
    %15 = vector.broadcast %cst_8 : f32 to vector<8x1xf32>
    %16 = arith.divf %14, %15 : vector<8x1xf32>
    %17 = vector.broadcast %9 : vector<8x1xf32> to vector<8x32xf32>
    %18 = arith.subf %1, %17 : vector<8x32xf32>
    %cst_9 = arith.constant 9.99999974E-6 : f32
    %19 = vector.broadcast %cst_9 : f32 to vector<8x1xf32>
    %20 = arith.addf %16, %19 : vector<8x1xf32>
    %21 = math.rsqrt %20 : vector<8x1xf32>
    %22 = vector.broadcast %21 : vector<8x1xf32> to vector<8x32xf32>
    %23 = arith.mulf %18, %22 : vector<8x32xf32>
    %24 = vector.shape_cast %3 : vector<32xf32> to vector<1x32xf32>
    %25 = vector.broadcast %24 : vector<1x32xf32> to vector<8x32xf32>
    %26 = arith.mulf %23, %25 : vector<8x32xf32>
    %27 = vector.shape_cast %5 : vector<32xf32> to vector<1x32xf32>
    %28 = vector.broadcast %27 : vector<1x32xf32> to vector<8x32xf32>
    %29 = arith.addf %26, %28 : vector<8x32xf32>
    %30 = arith.truncf %29 : vector<8x32xf32> to vector<8x32xbf16>
    %c0_10 = arith.constant 0 : index
    %c0_11 = arith.constant 0 : index
    %31 = vector.load %arg4[%c0_10, %c0_11] : memref<32x96xbf16, #tpu.memory_space<vmem>>, vector<32x96xbf16>
    %cst_12 = arith.constant dense<0.000000e+00> : vector<8x96xf32>
    %32 = tpu.matmul %30, %31, %cst_12 {dimension_numbers = #tpu.dot_dimension_numbers<[1], [0], [0], [1], [0, 0, 1, 1], [], []>} : vector<8x32xbf16>, vector<32x96xbf16>, vector<8x96xf32> -> vector<8x96xf32>
    %c0_13 = arith.constant 0 : index
    %c0_14 = arith.constant 0 : index
    %33 = vector.load %arg5[%c0_13, %c0_14] : memref<1x96xf32, #tpu.memory_space<vmem>>, vector<1x96xf32>
    %34 = vector.shape_cast %33 : vector<1x96xf32> to vector<96xf32>
    %35 = vector.shape_cast %34 : vector<96xf32> to vector<1x96xf32>
    %36 = vector.broadcast %35 : vector<1x96xf32> to vector<8x96xf32>
    %37 = arith.addf %32, %36 : vector<8x96xf32>
    %38 = tpu.iota {dimensions = array<i32: 0>} : vector<8x8xi32>
    %39 = tpu.iota {dimensions = array<i32: 1>} : vector<8x8xi32>
    %40 = arith.cmpi sle, %39, %38 : vector<8x8xi32>
    %cst_15 = arith.constant 0.000000e+00 : f32
    %41 = vector.broadcast %cst_15 : f32 to vector<8x32xf32>
    %42 = vector.extract_strided_slice %37 {offsets = [0, 0], sizes = [8, 8], strides = [1, 1]} : vector<8x96xf32> to vector<8x8xf32>
    %43 = arith.truncf %42 : vector<8x8xf32> to vector<8x8xbf16>
    %44 = vector.extract_strided_slice %37 {offsets = [0, 32], sizes = [8, 8], strides = [1, 1]} : vector<8x96xf32> to vector<8x8xf32>
    %45 = arith.truncf %44 : vector<8x8xf32> to vector<8x8xbf16>
    %46 = vector.extract_strided_slice %37 {offsets = [0, 64], sizes = [8, 8], strides = [1, 1]} : vector<8x96xf32> to vector<8x8xf32>
    %47 = arith.truncf %46 : vector<8x8xf32> to vector<8x8xbf16>
    %cst_16 = arith.constant dense<0.000000e+00> : vector<8x8xf32>
    %48 = tpu.matmul %43, %45, %cst_16 {dimension_numbers = #tpu.dot_dimension_numbers<[1], [1], [0], [0], [0, 0, 1, 0], [], []>} : vector<8x8xbf16>, vector<8x8xbf16>, vector<8x8xf32> -> vector<8x8xf32>
    %cst_17 = arith.constant 0xFF800000 : f32
    %49 = vector.broadcast %cst_17 : f32 to vector<8x8xf32>
    %50 = arith.select %40, %48, %49 : vector<8x8xi1>, vector<8x8xf32>
    %cst_18 = arith.constant dense<0xFF800000> : vector<8xf32>
    %51 = vector.multi_reduction <maximumf>, %50, %cst_18 [1] : vector<8x8xf32> to vector<8xf32>
    %52 = vector.shape_cast %51 : vector<8xf32> to vector<8x1xf32>
    %53 = vector.broadcast %52 : vector<8x1xf32> to vector<8x8xf32>
    %54 = arith.subf %50, %53 : vector<8x8xf32>
    %55 = math.exp %54 : vector<8x8xf32>
    %cst_19 = arith.constant dense<0.000000e+00> : vector<8xf32>
    %56 = vector.multi_reduction <add>, %55, %cst_19 [1] : vector<8x8xf32> to vector<8xf32>
    %57 = vector.shape_cast %56 : vector<8xf32> to vector<8x1xf32>
    %58 = tpu.reciprocal %57 {approx = true} : vector<8x1xf32> -> vector<8x1xf32>
    %59 = vector.broadcast %58 : vector<8x1xf32> to vector<8x8xf32>
    %60 = arith.mulf %55, %59 : vector<8x8xf32>
    %61 = arith.truncf %60 : vector<8x8xf32> to vector<8x8xbf16>
    %cst_20 = arith.constant dense<0.000000e+00> : vector<8x8xf32>
    %62 = tpu.matmul %61, %47, %cst_20 {dimension_numbers = #tpu.dot_dimension_numbers<[1], [0], [0], [1], [0, 0, 1, 1], [], []>} : vector<8x8xbf16>, vector<8x8xbf16>, vector<8x8xf32> -> vector<8x8xf32>
    %63 = arith.truncf %62 : vector<8x8xf32> to vector<8x8xbf16>
    %c0_21 = arith.constant 0 : index
    %c0_22 = arith.constant 0 : index
    %c0_23 = arith.constant 0 : index
    %64 = vector.load %arg6[%c0_21, %c0_22, %c0_23] : memref<4x8x32xbf16, #tpu.memory_space<vmem>>, vector<1x8x32xbf16>
    %65 = vector.shape_cast %64 : vector<1x8x32xbf16> to vector<8x32xbf16>
    %cst_24 = arith.constant dense<0.000000e+00> : vector<8x32xf32>
    %66 = tpu.matmul %63, %65, %cst_24 {dimension_numbers = #tpu.dot_dimension_numbers<[1], [0], [0], [1], [0, 0, 1, 1], [], []>} : vector<8x8xbf16>, vector<8x32xbf16>, vector<8x32xf32> -> vector<8x32xf32>
    %67 = arith.addf %41, %66 : vector<8x32xf32>
    %68 = vector.extract_strided_slice %37 {offsets = [0, 8], sizes = [8, 8], strides = [1, 1]} : vector<8x96xf32> to vector<8x8xf32>
    %69 = arith.truncf %68 : vector<8x8xf32> to vector<8x8xbf16>
    %70 = vector.extract_strided_slice %37 {offsets = [0, 40], sizes = [8, 8], strides = [1, 1]} : vector<8x96xf32> to vector<8x8xf32>
    %71 = arith.truncf %70 : vector<8x8xf32> to vector<8x8xbf16>
    %72 = vector.extract_strided_slice %37 {offsets = [0, 72], sizes = [8, 8], strides = [1, 1]} : vector<8x96xf32> to vector<8x8xf32>
    %73 = arith.truncf %72 : vector<8x8xf32> to vector<8x8xbf16>
    %cst_25 = arith.constant dense<0.000000e+00> : vector<8x8xf32>
    %74 = tpu.matmul %69, %71, %cst_25 {dimension_numbers = #tpu.dot_dimension_numbers<[1], [1], [0], [0], [0, 0, 1, 0], [], []>} : vector<8x8xbf16>, vector<8x8xbf16>, vector<8x8xf32> -> vector<8x8xf32>
    %cst_26 = arith.constant 0xFF800000 : f32
    %75 = vector.broadcast %cst_26 : f32 to vector<8x8xf32>
    %76 = arith.select %40, %74, %75 : vector<8x8xi1>, vector<8x8xf32>
    %cst_27 = arith.constant dense<0xFF800000> : vector<8xf32>
    %77 = vector.multi_reduction <maximumf>, %76, %cst_27 [1] : vector<8x8xf32> to vector<8xf32>
    %78 = vector.shape_cast %77 : vector<8xf32> to vector<8x1xf32>
    %79 = vector.broadcast %78 : vector<8x1xf32> to vector<8x8xf32>
    %80 = arith.subf %76, %79 : vector<8x8xf32>
    %81 = math.exp %80 : vector<8x8xf32>
    %cst_28 = arith.constant dense<0.000000e+00> : vector<8xf32>
    %82 = vector.multi_reduction <add>, %81, %cst_28 [1] : vector<8x8xf32> to vector<8xf32>
    %83 = vector.shape_cast %82 : vector<8xf32> to vector<8x1xf32>
    %84 = tpu.reciprocal %83 {approx = true} : vector<8x1xf32> -> vector<8x1xf32>
    %85 = vector.broadcast %84 : vector<8x1xf32> to vector<8x8xf32>
    %86 = arith.mulf %81, %85 : vector<8x8xf32>
    %87 = arith.truncf %86 : vector<8x8xf32> to vector<8x8xbf16>
    %cst_29 = arith.constant dense<0.000000e+00> : vector<8x8xf32>
    %88 = tpu.matmul %87, %73, %cst_29 {dimension_numbers = #tpu.dot_dimension_numbers<[1], [0], [0], [1], [0, 0, 1, 1], [], []>} : vector<8x8xbf16>, vector<8x8xbf16>, vector<8x8xf32> -> vector<8x8xf32>
    %89 = arith.truncf %88 : vector<8x8xf32> to vector<8x8xbf16>
    %c1 = arith.constant 1 : index
    %c0_30 = arith.constant 0 : index
    %c0_31 = arith.constant 0 : index
    %90 = vector.load %arg6[%c1, %c0_30, %c0_31] : memref<4x8x32xbf16, #tpu.memory_space<vmem>>, vector<1x8x32xbf16>
    %91 = vector.shape_cast %90 : vector<1x8x32xbf16> to vector<8x32xbf16>
    %cst_32 = arith.constant dense<0.000000e+00> : vector<8x32xf32>
    %92 = tpu.matmul %89, %91, %cst_32 {dimension_numbers = #tpu.dot_dimension_numbers<[1], [0], [0], [1], [0, 0, 1, 1], [], []>} : vector<8x8xbf16>, vector<8x32xbf16>, vector<8x32xf32> -> vector<8x32xf32>
    %93 = arith.addf %67, %92 : vector<8x32xf32>
    %94 = vector.extract_strided_slice %37 {offsets = [0, 16], sizes = [8, 8], strides = [1, 1]} : vector<8x96xf32> to vector<8x8xf32>
    %95 = arith.truncf %94 : vector<8x8xf32> to vector<8x8xbf16>
    %96 = vector.extract_strided_slice %37 {offsets = [0, 48], sizes = [8, 8], strides = [1, 1]} : vector<8x96xf32> to vector<8x8xf32>
    %97 = arith.truncf %96 : vector<8x8xf32> to vector<8x8xbf16>
    %98 = vector.extract_strided_slice %37 {offsets = [0, 80], sizes = [8, 8], strides = [1, 1]} : vector<8x96xf32> to vector<8x8xf32>
    %99 = arith.truncf %98 : vector<8x8xf32> to vector<8x8xbf16>
    %cst_33 = arith.constant dense<0.000000e+00> : vector<8x8xf32>
    %100 = tpu.matmul %95, %97, %cst_33 {dimension_numbers = #tpu.dot_dimension_numbers<[1], [1], [0], [0], [0, 0, 1, 0], [], []>} : vector<8x8xbf16>, vector<8x8xbf16>, vector<8x8xf32> -> vector<8x8xf32>
    %cst_34 = arith.constant 0xFF800000 : f32
    %101 = vector.broadcast %cst_34 : f32 to vector<8x8xf32>
    %102 = arith.select %40, %100, %101 : vector<8x8xi1>, vector<8x8xf32>
    %cst_35 = arith.constant dense<0xFF800000> : vector<8xf32>
    %103 = vector.multi_reduction <maximumf>, %102, %cst_35 [1] : vector<8x8xf32> to vector<8xf32>
    %104 = vector.shape_cast %103 : vector<8xf32> to vector<8x1xf32>
    %105 = vector.broadcast %104 : vector<8x1xf32> to vector<8x8xf32>
    %106 = arith.subf %102, %105 : vector<8x8xf32>
    %107 = math.exp %106 : vector<8x8xf32>
    %cst_36 = arith.constant dense<0.000000e+00> : vector<8xf32>
    %108 = vector.multi_reduction <add>, %107, %cst_36 [1] : vector<8x8xf32> to vector<8xf32>
    %109 = vector.shape_cast %108 : vector<8xf32> to vector<8x1xf32>
    %110 = tpu.reciprocal %109 {approx = true} : vector<8x1xf32> -> vector<8x1xf32>
    %111 = vector.broadcast %110 : vector<8x1xf32> to vector<8x8xf32>
    %112 = arith.mulf %107, %111 : vector<8x8xf32>
    %113 = arith.truncf %112 : vector<8x8xf32> to vector<8x8xbf16>
    %cst_37 = arith.constant dense<0.000000e+00> : vector<8x8xf32>
    %114 = tpu.matmul %113, %99, %cst_37 {dimension_numbers = #tpu.dot_dimension_numbers<[1], [0], [0], [1], [0, 0, 1, 1], [], []>} : vector<8x8xbf16>, vector<8x8xbf16>, vector<8x8xf32> -> vector<8x8xf32>
    %115 = arith.truncf %114 : vector<8x8xf32> to vector<8x8xbf16>
    %c2 = arith.constant 2 : index
    %c0_38 = arith.constant 0 : index
    %c0_39 = arith.constant 0 : index
    %116 = vector.load %arg6[%c2, %c0_38, %c0_39] : memref<4x8x32xbf16, #tpu.memory_space<vmem>>, vector<1x8x32xbf16>
    %117 = vector.shape_cast %116 : vector<1x8x32xbf16> to vector<8x32xbf16>
    %cst_40 = arith.constant dense<0.000000e+00> : vector<8x32xf32>
    %118 = tpu.matmul %115, %117, %cst_40 {dimension_numbers = #tpu.dot_dimension_numbers<[1], [0], [0], [1], [0, 0, 1, 1], [], []>} : vector<8x8xbf16>, vector<8x32xbf16>, vector<8x32xf32> -> vector<8x32xf32>
    %119 = arith.addf %93, %118 : vector<8x32xf32>
    %120 = vector.extract_strided_slice %37 {offsets = [0, 24], sizes = [8, 8], strides = [1, 1]} : vector<8x96xf32> to vector<8x8xf32>
    %121 = arith.truncf %120 : vector<8x8xf32> to vector<8x8xbf16>
    %122 = vector.extract_strided_slice %37 {offsets = [0, 56], sizes = [8, 8], strides = [1, 1]} : vector<8x96xf32> to vector<8x8xf32>
    %123 = arith.truncf %122 : vector<8x8xf32> to vector<8x8xbf16>
    %124 = vector.extract_strided_slice %37 {offsets = [0, 88], sizes = [8, 8], strides = [1, 1]} : vector<8x96xf32> to vector<8x8xf32>
    %125 = arith.truncf %124 : vector<8x8xf32> to vector<8x8xbf16>
    %cst_41 = arith.constant dense<0.000000e+00> : vector<8x8xf32>
    %126 = tpu.matmul %121, %123, %cst_41 {dimension_numbers = #tpu.dot_dimension_numbers<[1], [1], [0], [0], [0, 0, 1, 0], [], []>} : vector<8x8xbf16>, vector<8x8xbf16>, vector<8x8xf32> -> vector<8x8xf32>
    %cst_42 = arith.constant 0xFF800000 : f32
    %127 = vector.broadcast %cst_42 : f32 to vector<8x8xf32>
    %128 = arith.select %40, %126, %127 : vector<8x8xi1>, vector<8x8xf32>
    %cst_43 = arith.constant dense<0xFF800000> : vector<8xf32>
    %129 = vector.multi_reduction <maximumf>, %128, %cst_43 [1] : vector<8x8xf32> to vector<8xf32>
    %130 = vector.shape_cast %129 : vector<8xf32> to vector<8x1xf32>
    %131 = vector.broadcast %130 : vector<8x1xf32> to vector<8x8xf32>
    %132 = arith.subf %128, %131 : vector<8x8xf32>
    %133 = math.exp %132 : vector<8x8xf32>
    %cst_44 = arith.constant dense<0.000000e+00> : vector<8xf32>
    %134 = vector.multi_reduction <add>, %133, %cst_44 [1] : vector<8x8xf32> to vector<8xf32>
    %135 = vector.shape_cast %134 : vector<8xf32> to vector<8x1xf32>
    %136 = tpu.reciprocal %135 {approx = true} : vector<8x1xf32> -> vector<8x1xf32>
    %137 = vector.broadcast %136 : vector<8x1xf32> to vector<8x8xf32>
    %138 = arith.mulf %133, %137 : vector<8x8xf32>
    %139 = arith.truncf %138 : vector<8x8xf32> to vector<8x8xbf16>
    %cst_45 = arith.constant dense<0.000000e+00> : vector<8x8xf32>
    %140 = tpu.matmul %139, %125, %cst_45 {dimension_numbers = #tpu.dot_dimension_numbers<[1], [0], [0], [1], [0, 0, 1, 1], [], []>} : vector<8x8xbf16>, vector<8x8xbf16>, vector<8x8xf32> -> vector<8x8xf32>
    %141 = arith.truncf %140 : vector<8x8xf32> to vector<8x8xbf16>
    %c3 = arith.constant 3 : index
    %c0_46 = arith.constant 0 : index
    %c0_47 = arith.constant 0 : index
    %142 = vector.load %arg6[%c3, %c0_46, %c0_47] : memref<4x8x32xbf16, #tpu.memory_space<vmem>>, vector<1x8x32xbf16>
    %143 = vector.shape_cast %142 : vector<1x8x32xbf16> to vector<8x32xbf16>
    %cst_48 = arith.constant dense<0.000000e+00> : vector<8x32xf32>
    %144 = tpu.matmul %141, %143, %cst_48 {dimension_numbers = #tpu.dot_dimension_numbers<[1], [0], [0], [1], [0, 0, 1, 1], [], []>} : vector<8x8xbf16>, vector<8x32xbf16>, vector<8x32xf32> -> vector<8x32xf32>
    %145 = arith.addf %119, %144 : vector<8x32xf32>
    %146 = arith.addf %1, %145 : vector<8x32xf32>
    %c0_49 = arith.constant 0 : index
    %c0_50 = arith.constant 0 : index
    %147 = vector.load %arg7[%c0_49, %c0_50] : memref<1x32xf32, #tpu.memory_space<vmem>>, vector<1x32xf32>
    %148 = vector.shape_cast %147 : vector<1x32xf32> to vector<32xf32>
    %149 = vector.shape_cast %148 : vector<32xf32> to vector<1x32xf32>
    %150 = vector.broadcast %149 : vector<1x32xf32> to vector<8x32xf32>
    %151 = arith.addf %146, %150 : vector<8x32xf32>
    %c0_51 = arith.constant 0 : index
    %c0_52 = arith.constant 0 : index
    %152 = vector.load %arg8[%c0_51, %c0_52] : memref<1x32xf32, #tpu.memory_space<vmem>>, vector<1x32xf32>
    %153 = vector.shape_cast %152 : vector<1x32xf32> to vector<32xf32>
    %c0_53 = arith.constant 0 : index
    %c0_54 = arith.constant 0 : index
    %154 = vector.load %arg9[%c0_53, %c0_54] : memref<1x32xf32, #tpu.memory_space<vmem>>, vector<1x32xf32>
    %155 = vector.shape_cast %154 : vector<1x32xf32> to vector<32xf32>
    %cst_55 = arith.constant dense<0.000000e+00> : vector<8xf32>
    %156 = vector.multi_reduction <add>, %151, %cst_55 [1] : vector<8x32xf32> to vector<8xf32>
    %157 = vector.shape_cast %156 : vector<8xf32> to vector<8x1xf32>
    %cst_56 = arith.constant 3.200000e+01 : f32
    %158 = vector.broadcast %cst_56 : f32 to vector<8x1xf32>
    %159 = arith.divf %157, %158 : vector<8x1xf32>
    %160 = vector.broadcast %159 : vector<8x1xf32> to vector<8x32xf32>
    %161 = arith.subf %151, %160 : vector<8x32xf32>
    %162 = arith.mulf %161, %161 : vector<8x32xf32>
    %cst_57 = arith.constant dense<0.000000e+00> : vector<8xf32>
    %163 = vector.multi_reduction <add>, %162, %cst_57 [1] : vector<8x32xf32> to vector<8xf32>
    %164 = vector.shape_cast %163 : vector<8xf32> to vector<8x1xf32>
    %cst_58 = arith.constant 3.200000e+01 : f32
    %165 = vector.broadcast %cst_58 : f32 to vector<8x1xf32>
    %166 = arith.divf %164, %165 : vector<8x1xf32>
    %167 = vector.broadcast %159 : vector<8x1xf32> to vector<8x32xf32>
    %168 = arith.subf %151, %167 : vector<8x32xf32>
    %cst_59 = arith.constant 9.99999974E-6 : f32
    %169 = vector.broadcast %cst_59 : f32 to vector<8x1xf32>
    %170 = arith.addf %166, %169 : vector<8x1xf32>
    %171 = math.rsqrt %170 : vector<8x1xf32>
    %172 = vector.broadcast %171 : vector<8x1xf32> to vector<8x32xf32>
    %173 = arith.mulf %168, %172 : vector<8x32xf32>
    %174 = vector.shape_cast %153 : vector<32xf32> to vector<1x32xf32>
    %175 = vector.broadcast %174 : vector<1x32xf32> to vector<8x32xf32>
    %176 = arith.mulf %173, %175 : vector<8x32xf32>
    %177 = vector.shape_cast %155 : vector<32xf32> to vector<1x32xf32>
    %178 = vector.broadcast %177 : vector<1x32xf32> to vector<8x32xf32>
    %179 = arith.addf %176, %178 : vector<8x32xf32>
    %180 = arith.truncf %179 : vector<8x32xf32> to vector<8x32xbf16>
    %c0_60 = arith.constant 0 : index
    %c0_61 = arith.constant 0 : index
    %181 = vector.load %arg10[%c0_60, %c0_61] : memref<32x128xbf16, #tpu.memory_space<vmem>>, vector<32x128xbf16>
    %cst_62 = arith.constant dense<0.000000e+00> : vector<8x128xf32>
    %182 = tpu.matmul %180, %181, %cst_62 {dimension_numbers = #tpu.dot_dimension_numbers<[1], [0], [0], [1], [0, 0, 1, 1], [], []>} : vector<8x32xbf16>, vector<32x128xbf16>, vector<8x128xf32> -> vector<8x128xf32>
    %c0_63 = arith.constant 0 : index
    %c0_64 = arith.constant 0 : index
    %183 = vector.load %arg11[%c0_63, %c0_64] : memref<1x128xf32, #tpu.memory_space<vmem>>, vector<1x128xf32>
    %184 = vector.shape_cast %183 : vector<1x128xf32> to vector<128xf32>
    %185 = vector.shape_cast %184 : vector<128xf32> to vector<1x128xf32>
    %186 = vector.broadcast %185 : vector<1x128xf32> to vector<8x128xf32>
    %187 = arith.addf %182, %186 : vector<8x128xf32>
    %cst_65 = arith.constant 5.000000e-01 : f32
    %188 = vector.broadcast %cst_65 : f32 to vector<8x128xf32>
    %189 = arith.mulf %188, %187 : vector<8x128xf32>
    %cst_66 = arith.constant 4.471500e-02 : f32
    %190 = vector.broadcast %cst_66 : f32 to vector<8x128xf32>
    %191 = arith.mulf %190, %187 : vector<8x128xf32>
    %192 = arith.mulf %191, %187 : vector<8x128xf32>
    %193 = arith.mulf %192, %187 : vector<8x128xf32>
    %194 = arith.addf %187, %193 : vector<8x128xf32>
    %cst_67 = arith.constant 0.797884583 : f32
    %195 = vector.broadcast %cst_67 : f32 to vector<8x128xf32>
    %196 = arith.mulf %195, %194 : vector<8x128xf32>
    %197 = math.tanh %196 : vector<8x128xf32>
    %cst_68 = arith.constant 1.000000e+00 : f32
    %198 = vector.broadcast %cst_68 : f32 to vector<8x128xf32>
    %199 = arith.addf %198, %197 : vector<8x128xf32>
    %200 = arith.mulf %189, %199 : vector<8x128xf32>
    %201 = arith.truncf %200 : vector<8x128xf32> to vector<8x128xbf16>
    %c0_69 = arith.constant 0 : index
    %c0_70 = arith.constant 0 : index
    %202 = vector.load %arg12[%c0_69, %c0_70] : memref<128x32xbf16, #tpu.memory_space<vmem>>, vector<128x32xbf16>
    %cst_71 = arith.constant dense<0.000000e+00> : vector<8x32xf32>
    %203 = tpu.matmul %201, %202, %cst_71 {dimension_numbers = #tpu.dot_dimension_numbers<[1], [0], [0], [1], [0, 0, 1, 1], [], []>} : vector<8x128xbf16>, vector<128x32xbf16>, vector<8x32xf32> -> vector<8x32xf32>
    %c0_72 = arith.constant 0 : index
    %c0_73 = arith.constant 0 : index
    %204 = vector.load %arg13[%c0_72, %c0_73] : memref<1x32xf32, #tpu.memory_space<vmem>>, vector<1x32xf32>
    %205 = vector.shape_cast %204 : vector<1x32xf32> to vector<32xf32>
    %206 = vector.shape_cast %205 : vector<32xf32> to vector<1x32xf32>
    %207 = vector.broadcast %206 : vector<1x32xf32> to vector<8x32xf32>
    %208 = arith.addf %203, %207 : vector<8x32xf32>
    %209 = arith.addf %151, %208 : vector<8x32xf32>
    %c0_74 = arith.constant 0 : index
    %c0_75 = arith.constant 0 : index
    %c0_76 = arith.constant 0 : index
    %210 = vector.load %arg14[%c0_74, %c0_75, %c0_76] : memref<1x8x32xf32, #tpu.memory_space<vmem>>, vector<1x8x32xf32>
    %211 = vector.shape_cast %210 : vector<1x8x32xf32> to vector<8x32xf32>
    %212 = vector.shape_cast %209 : vector<8x32xf32> to vector<1x8x32xf32>
    tpu.vector_store %arg14[%c0_74, %c0_75, %c0_76], %212 {strides = array<i32>} : memref<1x8x32xf32, #tpu.memory_space<vmem>>, vector<1x8x32xf32>,
    return
  }
  func.func @transform_0(%arg0: i32) -> (i32, i32, i32) {
    %c0_i32 = arith.constant 0 : i32
    %c0_i32_0 = arith.constant 0 : i32
    %c0_i32_1 = arith.constant 0 : i32
    return %arg0, %c0_i32, %c0_i32_0 : i32, i32, i32
  }
  func.func @transform_1(%arg0: i32) -> (i32, i32) {
    %c0_i32 = arith.constant 0 : i32
    %c0_i32_0 = arith.constant 0 : i32
    %c0_i32_1 = arith.constant 0 : i32
    return %c0_i32, %c0_i32_0 : i32, i32
  }
  func.func @transform_2(%arg0: i32) -> (i32, i32) {
    %c0_i32 = arith.constant 0 : i32
    %c0_i32_0 = arith.constant 0 : i32
    %c0_i32_1 = arith.constant 0 : i32
    return %c0_i32, %c0_i32_0 : i32, i32
  }
  func.func @transform_3(%arg0: i32) -> (i32, i32) {
    %c0_i32 = arith.constant 0 : i32
    %c0_i32_0 = arith.constant 0 : i32
    %c0_i32_1 = arith.constant 0 : i32
    return %c0_i32, %c0_i32_0 : i32, i32
  }
  func.func @transform_4(%arg0: i32) -> (i32, i32) {
    %c0_i32 = arith.constant 0 : i32
    %c0_i32_0 = arith.constant 0 : i32
    %c0_i32_1 = arith.constant 0 : i32
    return %c0_i32, %c0_i32_0 : i32, i32
  }
  func.func @transform_5(%arg0: i32) -> (i32, i32, i32) {
    %c0_i32 = arith.constant 0 : i32
    %c0_i32_0 = arith.constant 0 : i32
    %c0_i32_1 = arith.constant 0 : i32
    %c0_i32_2 = arith.constant 0 : i32
    return %c0_i32, %c0_i32_0, %c0_i32_1 : i32, i32, i32
  }
  func.func @transform_6(%arg0: i32) -> (i32, i32) {
    %c0_i32 = arith.constant 0 : i32
    %c0_i32_0 = arith.constant 0 : i32
    %c0_i32_1 = arith.constant 0 : i32
    return %c0_i32, %c0_i32_0 : i32, i32
  }
  func.func @transform_7(%arg0: i32) -> (i32, i32) {
    %c0_i32 = arith.constant 0 : i32
    %c0_i32_0 = arith.constant 0 : i32
    %c0_i32_1 = arith.constant 0 : i32
    return %c0_i32, %c0_i32_0 : i32, i32
  }
  func.func @transform_8(%arg0: i32) -> (i32, i32) {
    %c0_i32 = arith.constant 0 : i32
    %c0_i32_0 = arith.constant 0 : i32
    %c0_i32_1 = arith.constant 0 : i32
    return %c0_i32, %c0_i32_0 : i32, i32
  }
  func.func @transform_9(%arg0: i32) -> (i32, i32) {
    %c0_i32 = arith.constant 0 : i32
    %c0_i32_0 = arith.constant 0 : i32
    %c0_i32_1 = arith.constant 0 : i32
    return %c0_i32, %c0_i32_0 : i32, i32
  }
  func.func @transform_10(%arg0: i32) -> (i32, i32) {
    %c0_i32 = arith.constant 0 : i32
    %c0_i32_0 = arith.constant 0 : i32
    %c0_i32_1 = arith.constant 0 : i32
    return %c0_i32, %c0_i32_0 : i32, i32
  }
  func.func @transform_11(%arg0: i32) -> (i32, i32) {
    %c0_i32 = arith.constant 0 : i32
    %c0_i32_0 = arith.constant 0 : i32
    %c0_i32_1 = arith.constant 0 : i32
    return %c0_i32, %c0_i32_0 : i32, i32
  }
  func.func @transform_12(%arg0: i32) -> (i32, i32) {
    %c0_i32 = arith.constant 0 : i32
    %c0_i32_0 = arith.constant 0 : i32
    %c0_i32_1 = arith.constant 0 : i32
    return %c0_i32, %c0_i32_0 : i32, i32
  }
  func.func @transform_13(%arg0: i32) -> (i32, i32, i32) {
    %c0_i32 = arith.constant 0 : i32
    %c0_i32_0 = arith.constant 0 : i32
    %c0_i32_1 = arith.constant 0 : i32
    return %arg0, %c0_i32, %c0_i32_0 : i32, i32, i32
  }
}

</mosaic_0001>

<bundles_post_ra>
// kernel: tpu_custom_call.1
= control target key start
LH: loop header
LB: loop body
LE: loop exit
PB: predicated region body
PF: predicated region fallthrough
CT: control target
= control target key end

     0   :  { %s1645_s0 = inlined_call_operand.vmem [shape: f32[2,8,32], index: 0, kind: input, shape index: {}]   ;;  %s1646_s1 = inlined_call_operand.vmem [shape: f32[1,32], index: 1, kind: input, shape index: {}]   ;;  %s1647_s2 = inlined_call_operand.vmem [shape: f32[1,32], index: 2, kind: input, shape index: {}]   ;;  %s1648_s3 = inlined_call_operand.vmem [shape: bf16[32,96], index: 3, kind: input, shape index: {}]   ;;  %s1649_s4 = inlined_call_operand.vmem [shape: f32[1,96], index: 4, kind: input, shape index: {}]   ;;  %s1650_s5 = inlined_call_operand.vmem [shape: bf16[4,8,32], index: 5, kind: input, shape index: {}]   ;;  %s1651_s6 = inlined_call_operand.vmem [shape: f32[1,32], index: 6, kind: input, shape index: {}]   ;;  %s1652_s7 = inlined_call_operand.vmem [shape: f32[1,32], index: 7, kind: input, shape index: {}]   ;;  %s1653_s8 = inlined_call_operand.vmem [shape: f32[1,32], index: 8, kind: input, shape index: {}]   ;;  %s1654_s9 = inlined_call_operand.vmem [shape: bf16[32,128], index: 9, kind: input, shape index: {}]   ;;  %s1655_s10 = inlined_call_operand.vmem [shape: f32[1,128], index: 10, kind: input, shape index: {}]   ;;  %s1656_s11 = inlined_call_operand.vmem [shape: bf16[128,32], index: 11, kind: input, shape index: {}]   ;;  %s1657_s12 = inlined_call_operand.vmem [shape: f32[1,32], index: 12, kind: input, shape index: {}]   ;;  %s1658_s13 = inlined_call_operand.hbm [shape: f32[2,8,32], index: 13, kind: output, shape index: {}]  }
   0x1   :  { %1659 = sst [smem:[#allocation5_spill]] %s1645_s0 }
   0x2   :  { %1660 = sst [smem:[#allocation6_spill]] %s1646_s1 }
   0x3   :  { %1661 = sst [smem:[#allocation7_spill]] %s1647_s2 }
   0x4   :  { %1662 = sst [smem:[#allocation8_spill]] %s1648_s3 }
   0x5   :  { %18 = vsyncpa [#allocation3], 0 }
   0x6   :  { %20 = vsyncpa [#allocation3 + $0x1], 0  ;;  %s1398_s25 = smov 0   ;;  %s1400_s26 = smov 0  }
   0x7   :  { %s1402_s27 = smov 0   ;;  %s1404_s28 = smov 0  }
   0x8 LB: > { %s1419_s29 = sadd.s32 4294967295, %s1314_s28   ;;  %s1082_s30 = sadd.s32 4294967294, %s1314_s28   ;;  %s1314_s28 = sphi %s1404_s28, %s1672_s28   ;;  %s1310_s27 = sphi %s1402_s27, %s1671_s27   ;;  %s1306_s26 = sphi %s1400_s26, %s1670_s26   ;;  %s1302_s25 = sphi %s1398_s25, %s1669_s25  }
   0x9   : > { %s1423_s14 = sadd.s32 1, %s1314_s28   ;;  %s311_s15 = sadd.s32 1, %s1310_s27 }
   0xa   : > { %s308_s16 = ssub.s32 %s1314_s28, %s1423_s14  ;;  %p321_p0 = scmp.ne.s32.totalorder %s1310_s27, %s1306_s26 }
   0xb   : > { %p309_p1 = scmp.eq.s32.totalorder %s308_s16, 0  ;;  %p322_p2 = scmp.eq.s32.totalorder %s1419_s29, 1 }
   0xc   : > { %p327_p3 = scmp.ne.s32.totalorder %s1306_s26, %s1302_s25  ;;  %p328_p4 = scmp.eq.s32.totalorder %s1082_s30, 1 }
   0xd   : > { %s1434_s17 = scalar_select %p309_p1, %s1310_s27, %s311_s15  }
   0xe   : > { %p1436_p5 = por %p322_p2, %p321_p0  ;;  %p1440_p6 = por %p328_p4, %p327_p3 }
   0xf   : > { %p1085_p7 = scmp.ge.s32.totalorder %s1314_s28, 1  ;;  %p389_p8 = scmp.lt.s32.totalorder %s1314_s28, 3 }
  0x11   : > { %p390_p9 = pnand %p1085_p7, %p389_p8 }
  0x12   : > { %p432_p10 = scmp.lt.s32.totalorder (!%p390_p9), %s1419_s29, 1  ;;  %s1665_s0 = sld [smem:[#allocation5_spill]] (!%p390_p9) }
  0x13   : > { %393 = sbr.rel (%p390_p9) target bundleno = 2302 (0x8fe), region = 72  ;;  %s1666_s3 = sld [smem:[#allocation8_spill]] (!%p390_p9) }
  0x14   : > { %s1667_s1 = sld [smem:[#allocation6_spill]] (!%p390_p9)  ;;  %s1317_s16 = smov (!%p390_p9), 88  }
  0x15   : > { %s1668_s2 = sld [smem:[#allocation7_spill]] (!%p390_p9)  ;;  %s1320_s22 = smov (!%p390_p9), 112  }
  0x16   : > { %s1321_s23 = smov (!%p390_p9), 64   ;;  %s1323_s30 = smov (!%p390_p9), 72  }
  0x17   : > { %s1324_s15 = smov (!%p390_p9), 104  }
  0x18   : > { %s433_s20 = scalar_select %p432_p10, %s1419_s29, 1  ;;  %vm440_vm0 = vcmask 261120   ;;  %v1316_v2 = vmov 32.0   ;;  %v1222_v32 = vld [vmem:[%s1649_s4] ss:$0 sm:$0xff]  ;;  %vm524_vm5 = vcmask 64512   ;;  %v515_v43 = vlaneseq }
  0x19   : > { %1228 = vrcp.f32 %v1316_v2  ;;  %v1158_v14 = vld [vmem:[%s1666_s3 + $0x8] sm:$0xff]  ;;  %v1157_v15 = vld [vmem:[%s1666_s3] sm:$0xff]  ;;  %vm562_vm7 = vcmask 1043456  }
  0x1a   : > { %s1087_s21 = sshll.u32 %s433_s20, 3  ;;  %508 = vmatpush.bf16.msra.mxu0 %v1158_v14  ;;  %v1220_v25 = vld [vmem:[%s1667_s1] ss:$0 sm:$0xff]  ;;  %s1318_s20 = smov 96   ;;  %v1488_v44 = vshrl.u32 %v515_v43, 7  ;;  %v1490_v45 = vand.u32 127, %v515_v43 }
  0x1b   : > { %s435_s24 = scalar_lea.vmem %s1665_s0, %s1087_s21  ;;  %v1221_v28 = vld [vmem:[%s1668_s2] ss:$0 sm:$0xff]  ;;  %s1319_s21 = smov 80  }
  0x1c   : > { %v1451_v0 = vld [vmem:[%s435_s24] sm:$0xff]  ;;  %vm519_vm6 = vcmp.le.s32.totalorder %v1490_v45, %v1488_v44  ;;  %s1322_s24 = smov 120   ;;  %s429_s0 = sand.u32 1, %s1306_s26  }
  0x1d   : > { %v441_v1 = vsel %vm440_vm0, %v1451_v0, 0.0  ;;  %v580_v55 = vld [vmem:[%s1650_s5] sm:$0xf]  ;;  %s1086_s1 = sshll.u32 %s429_s0, 3 }
  0x1e   : > { %442 = vadd.xlane.f32.xlu0 %v441_v1  ;;  %509 = vmatpush.bf16.msra.mxu0 %v1157_v15  ;;  %v664_v56 = vsel %vm562_vm7, %v580_v55, 0  ;;  %v1106_v55 = vld [vmem:[%s1650_s5 + $0x8] sm:$0xf] }
  0x1f   : > { %v1229_v3 = vpop.eup %1228  ;;  %673 = vmatpush.bf16.msra.mxu1 %v664_v56  ;;  %v743_v56 = vsel %vm562_vm7, %v1106_v55, 0 }
  0x20   : > { %v445_v4 = vmul.f32 32.0, %v1229_v3  ;;  %vm449_vm1 = vweird.f32 %v1229_v3 }
  0x22   : > { %v446_v5 = vsub.f32 1.0, %v445_v4 }
  0x24   : > { %v447_v6 = vmul.f32 %v1229_v3, %v446_v5 }
  0x26   : > { %v448_v7 = vadd.f32 %v1229_v3, %v447_v6 }
  0x28   : > { %v1455_v8 = vsel %vm449_vm1, %v1229_v3, %v448_v7 }
  0x91   : > { %v443_v9 = vpop.xlane.xlu0 %442 }
  0x92   : > { %v451_v10 = vmul.f32 %v1455_v8, %v443_v9 }
  0x94   : > { %v452_v11 = vsub.f32 %v1451_v0, %v451_v10 }
  0x96   : > { %v453_v12 = vmul.f32 %v452_v11, %v452_v11 }
  0x98   : > { %v454_v13 = vsel %vm440_vm0, %v453_v12, 0.0 }
  0x99   : > { %455 = vadd.xlane.f32.xlu0 %v454_v13 }
 0x10c   : > { %v456_v16 = vpop.xlane.xlu0 %455 }
 0x10d   : > { %v457_v17 = vmul.f32 %v456_v16, %v1455_v8 }
 0x10f   : > { %v458_v18 = vadd.f32 1e-05, %v457_v17 }
 0x111   : > { %1230 = vrsqrt.f32 %v458_v18  ;;  %vm465_vm3 = vweird.f32 %v458_v18 }
 0x117   : > { %v1231_v19 = vpop.eup %1230 }
 0x118   : > { %v460_v20 = vmul.f32 %v1231_v19, %v458_v18  ;;  %vm466_vm2 = vweird.f32 %v1231_v19 }
 0x119   : > { %vm467_vm4 = vmor %vm465_vm3, %vm466_vm2 }
 0x11a   : > { %v461_v21 = vmul.f32 %v1231_v19, %v460_v20 }
 0x11c   : > { %v462_v22 = vmul.f32 0.5, %v461_v21 }
 0x11e   : > { %v463_v23 = vsub.f32 1.5, %v462_v22 }
 0x120   : > { %v464_v24 = vmul.f32 %v1231_v19, %v463_v23 }
 0x122   : > { %v468_v26 = vsel %vm467_vm4, %v1231_v19, %v464_v24 }
 0x123   : > { %v469_v27 = vmul.f32 %v468_v26, %v452_v11 }
 0x125   : > { %v473_v29 = vmul.f32 %v1220_v25, %v469_v27 }
 0x127   : > { %v477_v30 = vadd.f32 %v1221_v28, %v473_v29 }
 0x129   : > { %v478_v31 = vpack.c.bf16 %v477_v30, %v477_v30 }
 0x12b   : > { %1096 = vmatmul.msk.bf16.vlgmr.msra.gmra.mxu0 %vm440_vm0, %v478_v31 }
 0x1a8   : > { %v511_v33 = vpop.f32.mrf.mxu0 }
 0x1a9   : > { %v512_v34 = vadd.f32 %v1222_v32, %v511_v33 }
 0x1ab   : > { %v1477_v35 = vpack.c.bf16 %v512_v34, %v512_v34 }
 0x1ad   : > { %583 = vrot.lane.b32.xlu0 %v1477_v35, %s1317_s16  ;;  %522 = vrot.lane.b32.xlu1 %v1477_v35, %s1318_s20 }
 0x1b0   : > { %v513_v36 = vpop.f32.mrf.mxu0 }
 0x1b5   : > { %681 = vrot.lane.b32.xlu0 %v1477_v35, %s1319_s21  ;;  %s1325_s21 = smov 40  }
 0x1bd   : > { %679 = vrot.lane.b32.xlu0 %v1477_v35, %s1320_s22  ;;  %s1326_s22 = smov 56  }
 0x21f   : > { %v584_v37 = vpop.permute.xlu0 %583  ;;  %v523_v38 = vpop.permute.xlu1 %522 }
 0x220   : > { %v529_v39 = vsel %vm524_vm5, %v523_v38, 0  ;;  %v589_v40 = vsel %vm524_vm5, %v584_v37, 0 }
 0x221   : > { %538 = vmatpush.bf16.xpose.msra.mxu3 %v529_v39 }
 0x227   : > { %v682_v41 = vpop.permute.xlu0 %681 }
 0x228   : > { %v687_v42 = vsel %vm524_vm5, %v682_v41, 0  ;;  %1097 = vmatmul.msk.bf16.vlgmr.msra.gmra.mxu3 %vm524_vm5, %v1477_v35 }
 0x229   : > { %598 = vmatpush.bf16.xpose.msrb.mxu3 %v589_v40 }
 0x22f   : > { %v680_v3 = vpop.permute.xlu0 %679 }
 0x231   : > { %696 = vmatpush.bf16.xpose.msra.mxu3 %v687_v42 }
 0x2ab   : > { %v540_v46 = vpop.f32.mrf.mxu3 }
 0x2ac   : > { %v544_v47 = vsel %vm519_vm6, %v540_v46, -inf }
 0x2ad   : > { %v545_v48 = vsel %vm524_vm5, %v544_v47, -inf }
 0x2ae   : > { %546 = vmax.xlane.f32.xlu1 %v545_v48 }
 0x2b3   : > { %v542_v49 = vpop.f32.mrf.mxu3 }
 0x321   : > { %v547_v50 = vpop.xlane.xlu1 %546 }
 0x322   : > { %v548_v51 = vsub.f32 %v544_v47, %v547_v50 }
 0x324   : > { %v549_v52 = vmul.f32 1.442695, %v548_v51 }
 0x326   : > { %1232 = vpow2.f32 %v549_v52  ;;  %v1101_v52 = vld [vmem:[%s1650_s5 + $0x4] sm:$0xf] }
 0x32c   : > { %v1233_v53 = vpop.eup %1232 }
 0x32d   : > { %v551_v54 = vsel %vm524_vm5, %v1233_v53, 0.0 }
 0x32e   : > { %552 = vadd.xlane.f32.xlu2 %v551_v54 }
 0x346   : > { %557 = vrot.lane.b32.xlu2 %v1477_v35, %s1321_s23  ;;  %s1327_s23 = smov 48  }
 0x34e   : > { %581 = vrot.lane.b32.xlu2 %v1477_v35, %s1322_s24  ;;  %s1154_s24 = sshll.u32 %s1419_s29, 3  ;;  %s1008_s29 = scalar_lea.sflag [#allocation3], %s429_s0 }
 0x356   : > { %761 = vrot.lane.b32.xlu2 %v1477_v35, %s1323_s30 }
 0x35e   : > { %759 = vrot.lane.b32.xlu2 %v1477_v35, %s1324_s15 }
 0x3a1   : > { %v553_v57 = vpop.xlane.xlu2 %552 }
 0x3a2   : > { %1234 = vrcp.f32 %v553_v57 }
 0x3a8   : > { %v1235_v58 = vpop.eup %1234 }
 0x3a9   : > { %v558_v59 = vpop.permute.xlu2 %557  ;;  %v555_v60 = vmul.f32 %v1235_v58, %v1233_v53  ;;  %v645_v53 = vsel %vm562_vm7, %v1101_v52, 0 }
 0x3aa   : > { %v564_v61 = vsel %vm562_vm7, %v558_v59, 0  ;;  %654 = vmatpush.bf16.msrb.mxu0 %v645_v53 }
 0x3ab   : > { %573 = vmatpush.bf16.msra.mxu2 %v564_v61  ;;  %v556_v62 = vpack.c.bf16 %v555_v60, %v555_v60  ;;  %v1110_v60 = vld [vmem:[%s1650_s5 + $0xc] sm:$0xf] }
 0x3ac   : > { %v823_v61 = vsel %vm562_vm7, %v1110_v60, 0 }
 0x3ae   : > { %1098 = vmatmul.msk.bf16.vlgmr.msra.gmra.mxu2 %vm524_vm5, %v556_v62  ;;  %752 = vmatpush.bf16.msra.mxu0 %v743_v56 }
 0x3b1   : > { %v582_v63 = vpop.permute.xlu2 %581 }
 0x3b2   : > { %1099 = vmatmul.msk.bf16.vlgmr.msrb.gmra.mxu3 %vm524_vm5, %v582_v63 }
 0x3b9   : > { %v762_v1 = vpop.permute.xlu2 %761 }
 0x3ba   : > { %v767_v2 = vsel %vm524_vm5, %v762_v1, 0 }
 0x3bb   : > { %776 = vmatpush.bf16.xpose.msrb.mxu1 %v767_v2 }
 0x3c1   : > { %v760_v12 = vpop.permute.xlu2 %759 }
 0x3c2   : > { %1104 = vmatmul.msk.bf16.vlgmr.msra.gmra.mxu3 %vm524_vm5, %v680_v3 }
 0x431   : > { %v575_v4 = vpop.f32.mrf.mxu2 }
 0x432   : > { %v579_v5 = vpack.c.bf16 %v575_v4, %v575_v4 }
 0x434   : > { %1103 = vmatmul.msk.bf16.vlgmr.msra.gmra.mxu1 %vm524_vm5, %v579_v5 }
 0x435   : > { %v600_v6 = vpop.f32.mrf.mxu3 }
 0x436   : > { %v604_v7 = vsel %vm519_vm6, %v600_v6, -inf }
 0x437   : > { %v605_v9 = vsel %vm524_vm5, %v604_v7, -inf }
 0x438   : > { %606 = vmax.xlane.f32.xlu1 %v605_v9 }
 0x439   : > { %v577_v10 = vpop.f32.mrf.mxu2 }
 0x43d   : > { %v602_v11 = vpop.f32.mrf.mxu3 }
 0x444   : > { %1108 = vmatmul.msk.bf16.vlgmr.msrb.gmra.mxu1 %vm524_vm5, %v760_v12 }
 0x445   : > { %v698_v13 = vpop.f32.mrf.mxu3 }
 0x446   : > { %v702_v14 = vsel %vm519_vm6, %v698_v13, -inf }
 0x447   : > { %v703_v15 = vsel %vm524_vm5, %v702_v14, -inf }
 0x448   : > { %704 = vmax.xlane.f32.xlu2 %v703_v15 }
 0x44d   : > { %v700_v16 = vpop.f32.mrf.mxu3 }
 0x460   : > { %795 = vrot.lane.b32.xlu2 %v1477_v35, %s1325_s21  ;;  %s1018_s21 = scalar_lea.hbm %s1658_s13, %s1154_s24 }
 0x461   : > { %s1022_s2 = sshll.u32 %s1018_s21, 4  ;;  %s1023_s2 = int_to_ptr.hbm [resolvable:$true] %s1022_s2 }
 0x462   : > { %s1266_s3 = sshra.s32 %s1023_s2, 4  ;;  %s1267_s3 = int_to_ptr.hbm [resolvable:$true] %s1266_s3 }
 0x463   : > { %s1268_s30 = scalar_lea.hbm %s1267_s3, 8  ;;  %p1273_p0 = scmp.lt.s32.totalorder %s1267_s3, %s1658_s13 }
 0x464   : > { %p1269_p11 = scmp.ne.s32.totalorder %s1267_s3, %s1268_s30 }
 0x466   : > { %p1270_p12 = pnand %p1269_p11, %p1436_p5 }
 0x468   : > { %p1271_p13 = pneg %p1270_p12 }
 0x4ab   : > { %v607_v17 = vpop.xlane.xlu1 %606 }
 0x4ac   : > { %v608_v18 = vsub.f32 %v604_v7, %v607_v17  ;;  %v1223_v17 = vld [vmem:[%s1651_s6] ss:$0 sm:$0xff] }
 0x4ae   : > { %v609_v19 = vmul.f32 1.442695, %v608_v18 }
 0x4b0   : > { %1236 = vpow2.f32 %v609_v19 }
 0x4b1   : > { %v1523_v20 = vpop.f32.mrf.mxu1 }
 0x4b6   : > { %v1237_v21 = vpop.eup %1236 }
 0x4b7   : > { %v611_v22 = vsel %vm524_vm5, %v1237_v21, 0.0 }
 0x4b8   : > { %612 = vadd.xlane.f32.xlu1 %v611_v22 }
 0x4b9   : > { %v677_v23 = vpop.f32.mrf.mxu1 }
 0x4bb   : > { %v705_v24 = vpop.xlane.xlu2 %704 }
 0x4bc   : > { %v706_v25 = vsub.f32 %v702_v14, %v705_v24 }
 0x4be   : > { %v707_v26 = vmul.f32 1.442695, %v706_v25 }
 0x4c0   : > { %1238 = vpow2.f32 %v707_v26 }
 0x4c1   : > { %v778_v27 = vpop.f32.mrf.mxu1 }
 0x4c2   : > { %v782_v28 = vsel %vm519_vm6, %v778_v27, -inf  ;;  %v1159_v27 = vld [vmem:[%s1654_s9] sm:$0xff] }
 0x4c3   : > { %v796_v29 = vpop.permute.xlu2 %795  ;;  %v783_v30 = vsel %vm524_vm5, %v782_v28, -inf }
 0x4c4   : > { %v801_v31 = vsel %vm562_vm7, %v796_v29, 0  ;;  %784 = vmax.xlane.f32.xlu0 %v783_v30 }
 0x4c5   : > { %810 = vmatpush.bf16.msrb.mxu3 %v801_v31  ;;  %v1167_v31 = vld [vmem:[%s1656_s11 + $0x30] sm:$0xff] }
 0x4c6   : > { %v1239_v32 = vpop.eup %1238 }
 0x4c7   : > { %v709_v34 = vsel %vm524_vm5, %v1239_v32, 0.0 }
 0x4c9   : > { %v780_v33 = vpop.f32.mrf.mxu1 }
 0x4cc   : > { %710 = vadd.xlane.f32.xlu0 %v709_v34 }
 0x4d1   : > { %617 = vrot.lane.b32.xlu1 %v1477_v35, %s1326_s22  ;;  %s431_s22 = scalar_lea.vmem [#allocation2], %s1086_s1  ;;  %s1272_s1 = scalar_lea.hbm %s1658_s13, 16 }
 0x4d2   : > { %p1274_p1 = scmp.lt.s32.totalorder %s1272_s1, %s1268_s30 }
 0x4d4   : > { %p1275_p2 = por %p1274_p1, %p1273_p0 }
 0x4d6   : > { %p1276_p3 = pnand %p1275_p2, %p1271_p13 }
 0x4e0   : > { %715 = vrot.lane.b32.xlu0 %v1477_v35, %s1327_s23  ;;  %s1020_s23 = sshll.u32 %s431_s22, 4  ;;  %s1021_s23 = int_to_ptr.vmem [resolvable:$true] %s1020_s23 }
 0x52b   : > { %v613_v36 = vpop.xlane.xlu1 %612 }
 0x52c   : > { %1240 = vrcp.f32 %v613_v36 }
 0x532   : > { %v1241_v40 = vpop.eup %1240 }
 0x533   : > { %v615_v42 = vmul.f32 %v1241_v40, %v1237_v21 }
 0x535   : > { %v616_v47 = vpack.c.bf16 %v615_v42, %v615_v42  ;;  %v1225_v42 = vld [vmem:[%s1653_s8] ss:$0 sm:$0xff] }
 0x537   : > { %v785_v37 = vpop.xlane.xlu0 %784 }
 0x538   : > { %v786_v38 = vsub.f32 %v782_v28, %v785_v37  ;;  %v1168_v28 = vld [vmem:[%s1656_s11 + $0x38] sm:$0xff] }
 0x539   : > { %992 = vmatpush.bf16.msra.mxu1 %v1168_v28 }
 0x53a   : > { %v787_v39 = vmul.f32 1.442695, %v786_v38 }
 0x53c   : > { %1242 = vpow2.f32 %v787_v39 }
 0x53d   : > { %993 = vmatpush.bf16.msra.mxu1 %v1167_v31 }
 0x53f   : > { %v711_v46 = vpop.xlane.xlu0 %710 }
 0x540   : > { %1244 = vrcp.f32 %v711_v46  ;;  %v1166_v46 = vld [vmem:[%s1656_s11 + $0x28] sm:$0xff] }
 0x541   : > { %994 = vmatpush.bf16.msra.mxu1 %v1166_v46 }
 0x542   : > { %v1243_v41 = vpop.eup %1242 }
 0x543   : > { %v618_v43 = vpop.permute.xlu1 %617  ;;  %v789_v44 = vsel %vm524_vm5, %v1243_v41, 0.0 }
 0x544   : > { %790 = vadd.xlane.f32.xlu1 %v789_v44  ;;  %v623_v45 = vsel %vm562_vm7, %v618_v43, 0 }
 0x545   : > { %632 = vmatpush.bf16.msrb.mxu2 %v623_v45 }
 0x546   : > { %v1245_v35 = vpop.eup %1244 }
 0x547   : > { %v713_v48 = vmul.f32 %v1245_v35, %v1239_v32  ;;  %v1164_v35 = vld [vmem:[%s1656_s11 + $0x18] sm:$0xff] }
 0x548   : > { %1100 = vmatmul.msk.bf16.vlgmr.msrb.gmra.mxu2 %vm524_vm5, %v616_v47  ;;  %v1165_v47 = vld [vmem:[%s1656_s11 + $0x20] sm:$0xff] }
 0x549   : > { %v714_v51 = vpack.c.bf16 %v713_v48, %v713_v48  ;;  %995 = vmatpush.bf16.msra.mxu1 %v1165_v47  ;;  %v1163_v48 = vld [vmem:[%s1656_s11 + $0x10] sm:$0xff] }
 0x54d   : > { %996 = vmatpush.bf16.msra.mxu1 %v1164_v35 }
 0x551   : > { %997 = vmatpush.bf16.msra.mxu1 %v1163_v48 }
 0x552   : > { %v716_v49 = vpop.permute.xlu0 %715 }
 0x553   : > { %v721_v50 = vsel %vm562_vm7, %v716_v49, 0  ;;  %v1162_v49 = vld [vmem:[%s1656_s11 + $0x8] sm:$0xff] }
 0x554   : > { %730 = vmatpush.bf16.msra.mxu2 %v721_v50  ;;  %v1161_v50 = vld [vmem:[%s1656_s11] sm:$0xff] }
 0x555   : > { %998 = vmatpush.bf16.msra.mxu1 %v1162_v49 }
 0x558   : > { %1105 = vmatmul.msk.bf16.vlgmr.msra.gmra.mxu2 %vm524_vm5, %v714_v51  ;;  %v1226_v51 = vld [vmem:[%s1655_s10] ss:$0 sm:$0xff] }
 0x559   : > { %832 = vmatpush.bf16.msrb.mxu2 %v823_v61  ;;  %999 = vmatpush.bf16.msra.mxu1 %v1161_v50 }
 0x5b7   : > { %v791_v54 = vpop.xlane.xlu1 %790 }
 0x5b8   : > { %1246 = vrcp.f32 %v791_v54 }
 0x5be   : > { %v1247_v57 = vpop.eup %1246 }
 0x5bf   : > { %v793_v58 = vmul.f32 %v1247_v57, %v1243_v41 }
 0x5c1   : > { %v794_v59 = vpack.c.bf16 %v793_v58, %v793_v58 }
 0x5c3   : > { %1109 = vmatmul.msk.bf16.vlgmr.msrb.gmra.mxu3 %vm524_vm5, %v794_v59 }
 0x5cb   : > { %v634_v62 = vpop.f32.mrf.mxu2 }
 0x5cc   : > { %v638_v63 = vpack.c.bf16 %v634_v62, %v634_v62 }
 0x5ce   : > { %1102 = vmatmul.msk.bf16.vlgmr.msrb.gmra.mxu0 %vm524_vm5, %v638_v63 }
 0x5d3   : > { %v636_v1 = vpop.f32.mrf.mxu2 }
 0x5db   : > { %v732_v2 = vpop.f32.mrf.mxu2 }
 0x5dc   : > { %v736_v3 = vpack.c.bf16 %v732_v2, %v732_v2  ;;  %v1227_v2 = vld [vmem:[%s1657_s12] ss:$0 sm:$0xff] }
 0x5de   : > { %1107 = vmatmul.msk.bf16.vlgmr.msra.gmra.mxu0 %vm524_vm5, %v736_v3 }
 0x5e3   : > { %v734_v4 = vpop.f32.mrf.mxu2 }
 0x646   : > { %v812_v5 = vpop.f32.mrf.mxu3 }
 0x647   : > { %v816_v6 = vpack.c.bf16 %v812_v5, %v812_v5 }
 0x649   : > { %1111 = vmatmul.msk.bf16.vlgmr.msrb.gmra.mxu2 %vm524_vm5, %v816_v6 }
 0x64b   : > { %v656_v7 = vpop.f32.mrf.mxu0 }
 0x64c   : > { %v676_v11 = vadd.f32 %v1523_v20, %v656_v7 }
 0x64e   : > { %v814_v9 = vpop.f32.mrf.mxu3 }
 0x653   : > { %v658_v10 = vpop.f32.mrf.mxu0 }
 0x65b   : > { %v754_v12 = vpop.f32.mrf.mxu0 }
 0x65c   : > { %v758_v13 = vadd.f32 %v754_v12, %v676_v11 }
 0x663   : > { %v756_v14 = vpop.f32.mrf.mxu0 }
 0x6cc   : > { %v834_v15 = vpop.f32.mrf.mxu2 }
 0x6cd   : > { %v838_v16 = vadd.f32 %v834_v15, %v758_v13 }
 0x6cf   : > { %v839_v18 = vadd.f32 %v838_v16, %v1451_v0  ;;  %v1160_v0 = vld [vmem:[%s1654_s9 + $0x8] sm:$0xff] }
 0x6d0   : > { %907 = vmatpush.bf16.msrb.mxu0 %v1160_v0 }
 0x6d1   : > { %v1560_v19 = vadd.f32 %v1223_v17, %v839_v18 }
 0x6d3   : > { %v847_v21 = vsel %vm440_vm0, %v1560_v19, 0.0 }
 0x6d4   : > { %848 = vadd.xlane.f32.xlu2 %v847_v21  ;;  %v836_v22 = vpop.f32.mrf.mxu2  ;;  %908 = vmatpush.bf16.msrb.mxu0 %v1159_v27 }
 0x747   : > { %v849_v23 = vpop.xlane.xlu2 %848 }
 0x748   : > { %v850_v20 = vmul.f32 %v849_v23, %v1455_v8 }
 0x74a   : > { %v851_v24 = vsub.f32 %v1560_v19, %v850_v20 }
 0x74c   : > { %v852_v25 = vmul.f32 %v851_v24, %v851_v24 }
 0x74e   : > { %v853_v26 = vsel %vm440_vm0, %v852_v25, 0.0 }
 0x74f   : > { %854 = vadd.xlane.f32.xlu0 %v853_v26 }
 0x7c2   : > { %v855_v29 = vpop.xlane.xlu0 %854 }
 0x7c3   : > { %v856_v30 = vmul.f32 %v855_v29, %v1455_v8  ;;  %v1224_v8 = vld [vmem:[%s1652_s7] ss:$0 sm:$0xff] }
 0x7c5   : > { %v857_v32 = vadd.f32 1e-05, %v856_v30 }
 0x7c7   : > { %1248 = vrsqrt.f32 %v857_v32  ;;  %vm864_vm9 = vweird.f32 %v857_v32 }
 0x7cd   : > { %v1249_v33 = vpop.eup %1248 }
 0x7ce   : > { %v859_v34 = vmul.f32 %v1249_v33, %v857_v32  ;;  %vm865_vm8 = vweird.f32 %v1249_v33 }
 0x7cf   : > { %vm866_vm10 = vmor %vm864_vm9, %vm865_vm8 }
 0x7d0   : > { %v860_v36 = vmul.f32 %v1249_v33, %v859_v34 }
 0x7d2   : > { %v861_v37 = vmul.f32 0.5, %v860_v36 }
 0x7d4   : > { %v862_v38 = vsub.f32 1.5, %v861_v37 }
 0x7d6   : > { %v863_v39 = vmul.f32 %v1249_v33, %v862_v38 }
 0x7d8   : > { %v867_v40 = vsel %vm866_vm10, %v1249_v33, %v863_v39 }
 0x7d9   : > { %v868_v41 = vmul.f32 %v867_v40, %v851_v24 }
 0x7db   : > { %v872_v43 = vmul.f32 %v1224_v8, %v868_v41 }
 0x7dd   : > { %v876_v44 = vadd.f32 %v1225_v42, %v872_v43 }
 0x7df   : > { %v877_v45 = vpack.c.bf16 %v876_v44, %v876_v44 }
 0x7e1   : > { %1120 = vmatmul.msk.bf16.vlgmr.msrb.gmra.mxu0 %vm440_vm0, %v877_v45 }
 0x85e   : > { %v910_v52 = vpop.f32.mrf.mxu0 }
 0x85f   : > { %v911_v53 = vadd.f32 %v1226_v51, %v910_v52 }
 0x861   : > { %v915_v54 = vmul.f32 0.044715, %v911_v53  ;;  %v914_v61 = vmul.f32 0.5, %v911_v53 }
 0x863   : > { %v916_v55 = vmul.f32 %v915_v54, %v911_v53 }
 0x865   : > { %v917_v56 = vmul.f32 %v916_v55, %v911_v53 }
 0x866   : > { %v912_v57 = vpop.f32.mrf.mxu0 }
 0x867   : > { %v918_v58 = vadd.f32 %v917_v56, %v911_v53 }
 0x869   : > { %v919_v59 = vmul.f32 0.7978846, %v918_v58 }
 0x86b   : > { %1250 = vtanh.f32 %v919_v59 }
 0x871   : > { %v1251_v60 = vpop.eup %1250 }
 0x872   : > { %v921_v62 = vadd.f32 1.0, %v1251_v60 }
 0x874   : > { %v922_v63 = vmul.f32 %v921_v62, %v914_v61 }
 0x876   : > { %v923_v1 = vpack.c.bf16 %v922_v63, %v922_v63 }
 0x878   : > { %1000 = vmatmul.bf16.vlgmr.msra.gmra.mxu1 %v923_v1 }
 0x8f5   : > { %v1001_v3 = vpop.f32.mrf.mxu1 }
 0x8f6   : > { %v1002_v4 = vadd.f32 %v1227_v2, %v1001_v3 }
 0x8f8   : > { %v1005_v5 = vadd.f32 %v1002_v4, %v1560_v19 }
 0x8fa   : > { %1006 = vst.msk [vmem:[%s431_s22] sm:$0xff] %vm440_vm0, %v1005_v5 }
 0x8fb   : > { %1279 = shalt.err (!%p1276_p3)
}
 0x8fc   : > { %1169 = dma.vmem_to_hbm [thread:$0]  (%p1436_p5), %s1021_s23, 128, %s1023_s2, %s1008_s29  }
 0x8fd   : > { %v1003_v6 = vpop.f32.mrf.mxu1 }
 0x8fe PF: > { %p1175_p4 = scmp.ge.s32.totalorder %s1314_s28, 2  ;;  %s1034_s0 = sand.u32 1, %s1302_s25  }
 0x8ff   : > { %s1035_s21 = scalar_lea.sflag [#allocation3], %s1034_s0 }
 0x900   : > { %p1172_p7 = pnand %p1175_p4, %p1440_p6 }
 0x902   : > { %p1173_p8 = pneg %p1172_p7 }
 0x904   : > { %1297 = dma.done.wait (%p1173_p8), %s1035_s21, 128  }
 0x905   : > { %1299 = vsyncadd (%p1173_p8), %s1035_s21, 4294967168  ;;  %p23_p9 = scmp.ge.s32.totalorder %s1423_s14, 4   ;;  %s1669_s25 = smov %s1306_s26 }
 0x906   : > { %s1670_s26 = smov %s1310_s27  ;;  %s1671_s27 = smov %s1434_s17 }
 0x907   : > { %s1672_s28 = smov %s1423_s14  ;;  %25 = sbr.rel (!%p23_p9) target bundleno = 8 (0x8), region = 110 }
 0x90c   :  { %1041 = vsyncpa [#allocation3], 1 }
 0x90d   :  { %1043 = vsyncpa [#allocation3 + $0x1], 1 }

</bundles_post_ra>
